<compile_context>
chip_gen: v5e
topology: v5e:2x2
jax: 0.10.0
libtpu: 0.0.40
codegen_flags: <defaults>
</compile_context>

<pallas_src>
import jax
import jax.numpy as jnp
import numpy as np
from jax.experimental import pallas as pl
from jax.experimental.pallas import tpu as pltpu  # noqa: F401  (TPU backend)


# ----------------------------- Pallas kernel ------------------------------ #
def _make_lstm_fc_kernel(H):
    """Build the whole-LSTM-forward + FC kernel for hidden size H (static)."""

    def kernel(x_ref, w_ih_ref, w_hh_ref, b_ref, w_fc_ref, b_fc_ref, out_ref):
        # x_ref    : (Bp, T)    batch-sublane-padded inputs (seq along lanes)
        # w_ih_ref : (1, GW)    input weights, natural i|f|g|o packing
        # w_hh_ref : (H, GW)    recurrent weights (rows = hidden units)
        # b_ref    : (1, GW)    merged bias (b_ih + b_hh)
        # w_fc_ref : (H, OP)    FC weights, output lanes padded to 128
        # b_fc_ref : (1, OP)    FC bias
        # out_ref  : (Bp, OP)   lane-dense output slab
        Bp, T = x_ref.shape
        GW = w_hh_ref.shape[1]

        # Load everything once; weights stay resident across all steps.
        x_all = x_ref[...]                        # (Bp, T) -- one vreg
        w_ih = w_ih_ref[...]                      # (1, GW)
        w_hh = w_hh_ref[...]                      # (H, GW)
        b = b_ref[...]                            # (1, GW)

        # Hoisted input projection: T live vregs, no h/c dependence, so the
        # scheduler can overlap it freely with the recurrence.
        gx = [x_all[:, t:t + 1] * w_ih + b for t in range(T)]   # each (Bp, GW)

        # Per-lane activation constants (hoisted out of the loop).
        # sigmoid(x) = 0.5*tanh(0.5*x) + 0.5 ; tanh(x) = 1.0*tanh(1.0*x) + 0.0
        lane = jax.lax.broadcasted_iota(jnp.int32, (Bp, GW), 1)
        is_g = jnp.logical_and(lane >= 2 * H, lane < 3 * H)
        pre = jnp.where(is_g, 1.0, 0.5).astype(jnp.float32)
        post = jnp.where(is_g, 1.0, 0.5).astype(jnp.float32)
        shift = jnp.where(is_g, 0.0, 0.5).astype(jnp.float32)

        h = jnp.zeros((Bp, H), jnp.float32)
        c = jnp.zeros((Bp, H), jnp.float32)

        # Fully unrolled recurrence (T is a static Python int).
        for t in range(T):
            if t == 0:
                gates = gx[0]                     # h0 == 0: skip the matmul
            else:
                gates = gx[t] + jnp.dot(h, w_hh,
                                        preferred_element_type=jnp.float32)
            # Single EUP push covering all four gates.
            act = jnp.tanh(gates * pre) * post + shift          # (Bp, GW)
            i_g = act[:, 0 * H:1 * H]
            f_g = act[:, 1 * H:2 * H]
            g_g = act[:, 2 * H:3 * H]
            o_g = act[:, 3 * H:4 * H]
            c = f_g * c + i_g * g_g
            h = o_g * jnp.tanh(c)

        # Final FC once, after the loop; lane-dense (Bp, OP) store.
        out_ref[...] = (jnp.dot(h, w_fc_ref[...],
                                preferred_element_type=jnp.float32)
                        + b_fc_ref[...])

    return kernel


# ------------------------------ JAX wrapper -------------------------------- #
def _round_up(n, m):
    return ((n + m - 1) // m) * m


def make_lstm_blockage_predictor(params):
    """Prepare kernel-layout weights once; return a jitted forward(x)->(B,10)."""
    w_ih, w_hh, b_ih, b_hh, w_fc, b_fc = params
    H = w_hh.shape[1]
    O = w_fc.shape[0]
    GW = _round_up(4 * H, 128)      # gate slab width (== 4H == 128 for H=32)
    OP = _round_up(O, 128)          # lane-aligned FC output width
    f32 = jnp.float32

    # One-time layout prep (transpose / pad / bias merge) -- NOT per call.
    w_ih_k = jnp.pad(jnp.transpose(w_ih).astype(f32),
                     ((0, 0), (0, GW - 4 * H)))                    # (1, GW)
    w_hh_k = jnp.pad(jnp.transpose(w_hh).astype(f32),
                     ((0, 0), (0, GW - 4 * H)))                    # (H, GW)
    b_k = jnp.pad((b_ih + b_hh).astype(f32).reshape(1, 4 * H),
                  ((0, 0), (0, GW - 4 * H)))                       # (1, GW)
    w_fc_k = jnp.pad(jnp.transpose(w_fc).astype(f32),
                     ((0, 0), (0, OP - O)))                        # (H, OP)
    b_fc_k = jnp.pad(b_fc.astype(f32).reshape(1, O),
                     ((0, 0), (0, OP - O)))                        # (1, OP)

    kernel = _make_lstm_fc_kernel(H)

    @jax.jit
    def forward(x):
        B, T, _ = x.shape
        Bp = _round_up(B, 8)        # sublane-aligned batch
        # Per-call prep: only squeeze + batch pad.
        x2d = x.astype(f32)[..., 0]                               # (B, T)
        x2d = jnp.pad(x2d, ((0, Bp - B), (0, 0)))                 # (Bp, T)

        out_full = pl.pallas_call(
            kernel,
            out_shape=jax.ShapeDtypeStruct((Bp, OP), f32),
        )(x2d, w_ih_k, w_hh_k, b_k, w_fc_k, b_fc_k)

        return out_full[:B, :O]

    return forward


# -------------------------- parameter construction ------------------------- #
def init_params(key, hidden_dim=32, out_dim=10):
    """Deterministic params with PyTorch-default U(-1/sqrt(H), 1/sqrt(H)) init."""
    k = 1.0 / np.sqrt(hidden_dim)
    ks = jax.random.split(key, 6)
    w_ih = jax.random.uniform(ks[0], (4 * hidden_dim, 1), jnp.float32, -k, k)
    w_hh = jax.random.uniform(ks[1], (4 * hidden_dim, hidden_dim), jnp.float32, -k, k)
    b_ih = jax.random.uniform(ks[2], (4 * hidden_dim,), jnp.float32, -k, k)
    b_hh = jax.random.uniform(ks[3], (4 * hidden_dim,), jnp.float32, -k, k)
    w_fc = jax.random.uniform(ks[4], (out_dim, hidden_dim), jnp.float32, -k, k)
    b_fc = jax.random.uniform(ks[5], (out_dim,), jnp.float32, -k, k)
    return (w_ih, w_hh, b_ih, b_hh, w_fc, b_fc)


# ----------------------------- pure-JAX reference -------------------------- #
def reference_forward(x, params):
    w_ih, w_hh, b_ih, b_hh, w_fc, b_fc = params
    B, T, _ = x.shape
    H = w_hh.shape[1]
    h = jnp.zeros((B, H), jnp.float32)
    c = jnp.zeros((B, H), jnp.float32)
    for t in range(T):
        xt = x[:, t, :]                                          # (B, 1)
        gates = xt @ w_ih.T + h @ w_hh.T + b_ih + b_hh           # (B, 4H)
        i_g = jax.nn.sigmoid(gates[:, 0:H])
        f_g = jax.nn.sigmoid(gates[:, H:2 * H])
        g_g = jnp.tanh(gates[:, 2 * H:3 * H])
        o_g = jax.nn.sigmoid(gates[:, 3 * H:4 * H])
        c = f_g * c + i_g * g_g
        h = o_g * jnp.tanh(c)
    return h @ w_fc.T + b_fc


# ---------------------------------- main ----------------------------------- #
if __name__ == "__main__":
    B, T, HIDDEN = 2, 8, 32
    key = jax.random.PRNGKey(0)
    k_x, k_p = jax.random.split(key)
    x = jax.random.normal(k_x, (B, T, 1), dtype=jnp.float32)
    params = init_params(k_p, hidden_dim=HIDDEN, out_dim=10)

    forward = make_lstm_blockage_predictor(params)   # one-time weight prep
    out = jax.block_until_ready(forward(x))

    ref = reference_forward(x, params)
    np.testing.assert_allclose(np.asarray(out), np.asarray(ref),
                               rtol=1e-5, atol=1e-5)
    print("KERNEL_OK")
</pallas_src>

<mosaic_0001>
module attributes {stable_mosaic.version = 11 : i64} {
  func.func @kernel(%arg0: memref<8x8xf32, #tpu.memory_space<vmem>>, %arg1: memref<1x128xf32, #tpu.memory_space<vmem>>, %arg2: memref<32x128xf32, #tpu.memory_space<vmem>>, %arg3: memref<1x128xf32, #tpu.memory_space<vmem>>, %arg4: memref<32x128xf32, #tpu.memory_space<vmem>>, %arg5: memref<1x128xf32, #tpu.memory_space<vmem>>, %arg6: memref<8x128xf32, #tpu.memory_space<vmem>>) attributes {dimension_semantics = [], scalar_prefetch = 0 : i64, scratch_operands = 0 : i64, tpu.core_type = #tpu.core_type<tc>} {
    %c0 = arith.constant 0 : index
    %c0_0 = arith.constant 0 : index
    %0 = vector.load %arg0[%c0, %c0_0] : memref<8x8xf32, #tpu.memory_space<vmem>>, vector<8x8xf32>
    %c0_1 = arith.constant 0 : index
    %c0_2 = arith.constant 0 : index
    %1 = vector.load %arg1[%c0_1, %c0_2] : memref<1x128xf32, #tpu.memory_space<vmem>>, vector<1x128xf32>
    %c0_3 = arith.constant 0 : index
    %c0_4 = arith.constant 0 : index
    %2 = vector.load %arg2[%c0_3, %c0_4] : memref<32x128xf32, #tpu.memory_space<vmem>>, vector<32x128xf32>
    %c0_5 = arith.constant 0 : index
    %c0_6 = arith.constant 0 : index
    %3 = vector.load %arg3[%c0_5, %c0_6] : memref<1x128xf32, #tpu.memory_space<vmem>>, vector<1x128xf32>
    %4 = vector.extract_strided_slice %0 {offsets = [0, 0], sizes = [8, 1], strides = [1, 1]} : vector<8x8xf32> to vector<8x1xf32>
    %5 = vector.broadcast %4 : vector<8x1xf32> to vector<8x128xf32>
    %6 = vector.broadcast %1 : vector<1x128xf32> to vector<8x128xf32>
    %7 = arith.mulf %5, %6 : vector<8x128xf32>
    %8 = vector.broadcast %3 : vector<1x128xf32> to vector<8x128xf32>
    %9 = arith.addf %7, %8 : vector<8x128xf32>
    %10 = vector.extract_strided_slice %0 {offsets = [0, 1], sizes = [8, 1], strides = [1, 1]} : vector<8x8xf32> to vector<8x1xf32>
    %11 = vector.broadcast %10 : vector<8x1xf32> to vector<8x128xf32>
    %12 = vector.broadcast %1 : vector<1x128xf32> to vector<8x128xf32>
    %13 = arith.mulf %11, %12 : vector<8x128xf32>
    %14 = vector.broadcast %3 : vector<1x128xf32> to vector<8x128xf32>
    %15 = arith.addf %13, %14 : vector<8x128xf32>
    %16 = vector.extract_strided_slice %0 {offsets = [0, 2], sizes = [8, 1], strides = [1, 1]} : vector<8x8xf32> to vector<8x1xf32>
    %17 = vector.broadcast %16 : vector<8x1xf32> to vector<8x128xf32>
    %18 = vector.broadcast %1 : vector<1x128xf32> to vector<8x128xf32>
    %19 = arith.mulf %17, %18 : vector<8x128xf32>
    %20 = vector.broadcast %3 : vector<1x128xf32> to vector<8x128xf32>
    %21 = arith.addf %19, %20 : vector<8x128xf32>
    %22 = vector.extract_strided_slice %0 {offsets = [0, 3], sizes = [8, 1], strides = [1, 1]} : vector<8x8xf32> to vector<8x1xf32>
    %23 = vector.broadcast %22 : vector<8x1xf32> to vector<8x128xf32>
    %24 = vector.broadcast %1 : vector<1x128xf32> to vector<8x128xf32>
    %25 = arith.mulf %23, %24 : vector<8x128xf32>
    %26 = vector.broadcast %3 : vector<1x128xf32> to vector<8x128xf32>
    %27 = arith.addf %25, %26 : vector<8x128xf32>
    %28 = vector.extract_strided_slice %0 {offsets = [0, 4], sizes = [8, 1], strides = [1, 1]} : vector<8x8xf32> to vector<8x1xf32>
    %29 = vector.broadcast %28 : vector<8x1xf32> to vector<8x128xf32>
    %30 = vector.broadcast %1 : vector<1x128xf32> to vector<8x128xf32>
    %31 = arith.mulf %29, %30 : vector<8x128xf32>
    %32 = vector.broadcast %3 : vector<1x128xf32> to vector<8x128xf32>
    %33 = arith.addf %31, %32 : vector<8x128xf32>
    %34 = vector.extract_strided_slice %0 {offsets = [0, 5], sizes = [8, 1], strides = [1, 1]} : vector<8x8xf32> to vector<8x1xf32>
    %35 = vector.broadcast %34 : vector<8x1xf32> to vector<8x128xf32>
    %36 = vector.broadcast %1 : vector<1x128xf32> to vector<8x128xf32>
    %37 = arith.mulf %35, %36 : vector<8x128xf32>
    %38 = vector.broadcast %3 : vector<1x128xf32> to vector<8x128xf32>
    %39 = arith.addf %37, %38 : vector<8x128xf32>
    %40 = vector.extract_strided_slice %0 {offsets = [0, 6], sizes = [8, 1], strides = [1, 1]} : vector<8x8xf32> to vector<8x1xf32>
    %41 = vector.broadcast %40 : vector<8x1xf32> to vector<8x128xf32>
    %42 = vector.broadcast %1 : vector<1x128xf32> to vector<8x128xf32>
    %43 = arith.mulf %41, %42 : vector<8x128xf32>
    %44 = vector.broadcast %3 : vector<1x128xf32> to vector<8x128xf32>
    %45 = arith.addf %43, %44 : vector<8x128xf32>
    %46 = vector.extract_strided_slice %0 {offsets = [0, 7], sizes = [8, 1], strides = [1, 1]} : vector<8x8xf32> to vector<8x1xf32>
    %47 = vector.broadcast %46 : vector<8x1xf32> to vector<8x128xf32>
    %48 = vector.broadcast %1 : vector<1x128xf32> to vector<8x128xf32>
    %49 = arith.mulf %47, %48 : vector<8x128xf32>
    %50 = vector.broadcast %3 : vector<1x128xf32> to vector<8x128xf32>
    %51 = arith.addf %49, %50 : vector<8x128xf32>
    %52 = tpu.iota {dimensions = array<i32: 1>} : vector<8x128xi32>
    %c64_i32 = arith.constant 64 : i32
    %53 = vector.broadcast %c64_i32 : i32 to vector<8x128xi32>
    %54 = arith.cmpi sge, %52, %53 : vector<8x128xi32>
    %c96_i32 = arith.constant 96 : i32
    %55 = vector.broadcast %c96_i32 : i32 to vector<8x128xi32>
    %56 = arith.cmpi slt, %52, %55 : vector<8x128xi32>
    %57 = arith.andi %54, %56 : vector<8x128xi1>
    %cst = arith.constant 1.000000e+00 : f32
    %cst_7 = arith.constant 5.000000e-01 : f32
    %58 = vector.broadcast %cst : f32 to vector<8x128xf32>
    %59 = vector.broadcast %cst_7 : f32 to vector<8x128xf32>
    %60 = arith.select %57, %58, %59 : vector<8x128xi1>, vector<8x128xf32>
    %cst_8 = arith.constant 1.000000e+00 : f32
    %cst_9 = arith.constant 5.000000e-01 : f32
    %61 = vector.broadcast %cst_8 : f32 to vector<8x128xf32>
    %62 = vector.broadcast %cst_9 : f32 to vector<8x128xf32>
    %63 = arith.select %57, %61, %62 : vector<8x128xi1>, vector<8x128xf32>
    %cst_10 = arith.constant 0.000000e+00 : f32
    %cst_11 = arith.constant 5.000000e-01 : f32
    %64 = vector.broadcast %cst_10 : f32 to vector<8x128xf32>
    %65 = vector.broadcast %cst_11 : f32 to vector<8x128xf32>
    %66 = arith.select %57, %64, %65 : vector<8x128xi1>, vector<8x128xf32>
    %cst_12 = arith.constant 0.000000e+00 : f32
    %67 = vector.broadcast %cst_12 : f32 to vector<8x32xf32>
    %68 = arith.mulf %9, %60 : vector<8x128xf32>
    %69 = math.tanh %68 : vector<8x128xf32>
    %70 = arith.mulf %69, %63 : vector<8x128xf32>
    %71 = arith.addf %70, %66 : vector<8x128xf32>
    %72 = vector.extract_strided_slice %71 {offsets = [0, 0], sizes = [8, 32], strides = [1, 1]} : vector<8x128xf32> to vector<8x32xf32>
    %73 = vector.extract_strided_slice %71 {offsets = [0, 32], sizes = [8, 32], strides = [1, 1]} : vector<8x128xf32> to vector<8x32xf32>
    %74 = vector.extract_strided_slice %71 {offsets = [0, 64], sizes = [8, 32], strides = [1, 1]} : vector<8x128xf32> to vector<8x32xf32>
    %75 = vector.extract_strided_slice %71 {offsets = [0, 96], sizes = [8, 32], strides = [1, 1]} : vector<8x128xf32> to vector<8x32xf32>
    %76 = arith.mulf %73, %67 : vector<8x32xf32>
    %77 = arith.mulf %72, %74 : vector<8x32xf32>
    %78 = arith.addf %76, %77 : vector<8x32xf32>
    %79 = math.tanh %78 : vector<8x32xf32>
    %80 = arith.mulf %75, %79 : vector<8x32xf32>
    %cst_13 = arith.constant dense<0.000000e+00> : vector<8x128xf32>
    %81 = tpu.matmul %80, %2, %cst_13 {dimension_numbers = #tpu.dot_dimension_numbers<[1], [0], [0], [1], [0, 0, 1, 1], [], []>} : vector<8x32xf32>, vector<32x128xf32>, vector<8x128xf32> -> vector<8x128xf32>
    %82 = arith.addf %15, %81 : vector<8x128xf32>
    %83 = arith.mulf %82, %60 : vector<8x128xf32>
    %84 = math.tanh %83 : vector<8x128xf32>
    %85 = arith.mulf %84, %63 : vector<8x128xf32>
    %86 = arith.addf %85, %66 : vector<8x128xf32>
    %87 = vector.extract_strided_slice %86 {offsets = [0, 0], sizes = [8, 32], strides = [1, 1]} : vector<8x128xf32> to vector<8x32xf32>
    %88 = vector.extract_strided_slice %86 {offsets = [0, 32], sizes = [8, 32], strides = [1, 1]} : vector<8x128xf32> to vector<8x32xf32>
    %89 = vector.extract_strided_slice %86 {offsets = [0, 64], sizes = [8, 32], strides = [1, 1]} : vector<8x128xf32> to vector<8x32xf32>
    %90 = vector.extract_strided_slice %86 {offsets = [0, 96], sizes = [8, 32], strides = [1, 1]} : vector<8x128xf32> to vector<8x32xf32>
    %91 = arith.mulf %88, %78 : vector<8x32xf32>
    %92 = arith.mulf %87, %89 : vector<8x32xf32>
    %93 = arith.addf %91, %92 : vector<8x32xf32>
    %94 = math.tanh %93 : vector<8x32xf32>
    %95 = arith.mulf %90, %94 : vector<8x32xf32>
    %cst_14 = arith.constant dense<0.000000e+00> : vector<8x128xf32>
    %96 = tpu.matmul %95, %2, %cst_14 {dimension_numbers = #tpu.dot_dimension_numbers<[1], [0], [0], [1], [0, 0, 1, 1], [], []>} : vector<8x32xf32>, vector<32x128xf32>, vector<8x128xf32> -> vector<8x128xf32>
    %97 = arith.addf %21, %96 : vector<8x128xf32>
    %98 = arith.mulf %97, %60 : vector<8x128xf32>
    %99 = math.tanh %98 : vector<8x128xf32>
    %100 = arith.mulf %99, %63 : vector<8x128xf32>
    %101 = arith.addf %100, %66 : vector<8x128xf32>
    %102 = vector.extract_strided_slice %101 {offsets = [0, 0], sizes = [8, 32], strides = [1, 1]} : vector<8x128xf32> to vector<8x32xf32>
    %103 = vector.extract_strided_slice %101 {offsets = [0, 32], sizes = [8, 32], strides = [1, 1]} : vector<8x128xf32> to vector<8x32xf32>
    %104 = vector.extract_strided_slice %101 {offsets = [0, 64], sizes = [8, 32], strides = [1, 1]} : vector<8x128xf32> to vector<8x32xf32>
    %105 = vector.extract_strided_slice %101 {offsets = [0, 96], sizes = [8, 32], strides = [1, 1]} : vector<8x128xf32> to vector<8x32xf32>
    %106 = arith.mulf %103, %93 : vector<8x32xf32>
    %107 = arith.mulf %102, %104 : vector<8x32xf32>
    %108 = arith.addf %106, %107 : vector<8x32xf32>
    %109 = math.tanh %108 : vector<8x32xf32>
    %110 = arith.mulf %105, %109 : vector<8x32xf32>
    %cst_15 = arith.constant dense<0.000000e+00> : vector<8x128xf32>
    %111 = tpu.matmul %110, %2, %cst_15 {dimension_numbers = #tpu.dot_dimension_numbers<[1], [0], [0], [1], [0, 0, 1, 1], [], []>} : vector<8x32xf32>, vector<32x128xf32>, vector<8x128xf32> -> vector<8x128xf32>
    %112 = arith.addf %27, %111 : vector<8x128xf32>
    %113 = arith.mulf %112, %60 : vector<8x128xf32>
    %114 = math.tanh %113 : vector<8x128xf32>
    %115 = arith.mulf %114, %63 : vector<8x128xf32>
    %116 = arith.addf %115, %66 : vector<8x128xf32>
    %117 = vector.extract_strided_slice %116 {offsets = [0, 0], sizes = [8, 32], strides = [1, 1]} : vector<8x128xf32> to vector<8x32xf32>
    %118 = vector.extract_strided_slice %116 {offsets = [0, 32], sizes = [8, 32], strides = [1, 1]} : vector<8x128xf32> to vector<8x32xf32>
    %119 = vector.extract_strided_slice %116 {offsets = [0, 64], sizes = [8, 32], strides = [1, 1]} : vector<8x128xf32> to vector<8x32xf32>
    %120 = vector.extract_strided_slice %116 {offsets = [0, 96], sizes = [8, 32], strides = [1, 1]} : vector<8x128xf32> to vector<8x32xf32>
    %121 = arith.mulf %118, %108 : vector<8x32xf32>
    %122 = arith.mulf %117, %119 : vector<8x32xf32>
    %123 = arith.addf %121, %122 : vector<8x32xf32>
    %124 = math.tanh %123 : vector<8x32xf32>
    %125 = arith.mulf %120, %124 : vector<8x32xf32>
    %cst_16 = arith.constant dense<0.000000e+00> : vector<8x128xf32>
    %126 = tpu.matmul %125, %2, %cst_16 {dimension_numbers = #tpu.dot_dimension_numbers<[1], [0], [0], [1], [0, 0, 1, 1], [], []>} : vector<8x32xf32>, vector<32x128xf32>, vector<8x128xf32> -> vector<8x128xf32>
    %127 = arith.addf %33, %126 : vector<8x128xf32>
    %128 = arith.mulf %127, %60 : vector<8x128xf32>
    %129 = math.tanh %128 : vector<8x128xf32>
    %130 = arith.mulf %129, %63 : vector<8x128xf32>
    %131 = arith.addf %130, %66 : vector<8x128xf32>
    %132 = vector.extract_strided_slice %131 {offsets = [0, 0], sizes = [8, 32], strides = [1, 1]} : vector<8x128xf32> to vector<8x32xf32>
    %133 = vector.extract_strided_slice %131 {offsets = [0, 32], sizes = [8, 32], strides = [1, 1]} : vector<8x128xf32> to vector<8x32xf32>
    %134 = vector.extract_strided_slice %131 {offsets = [0, 64], sizes = [8, 32], strides = [1, 1]} : vector<8x128xf32> to vector<8x32xf32>
    %135 = vector.extract_strided_slice %131 {offsets = [0, 96], sizes = [8, 32], strides = [1, 1]} : vector<8x128xf32> to vector<8x32xf32>
    %136 = arith.mulf %133, %123 : vector<8x32xf32>
    %137 = arith.mulf %132, %134 : vector<8x32xf32>
    %138 = arith.addf %136, %137 : vector<8x32xf32>
    %139 = math.tanh %138 : vector<8x32xf32>
    %140 = arith.mulf %135, %139 : vector<8x32xf32>
    %cst_17 = arith.constant dense<0.000000e+00> : vector<8x128xf32>
    %141 = tpu.matmul %140, %2, %cst_17 {dimension_numbers = #tpu.dot_dimension_numbers<[1], [0], [0], [1], [0, 0, 1, 1], [], []>} : vector<8x32xf32>, vector<32x128xf32>, vector<8x128xf32> -> vector<8x128xf32>
    %142 = arith.addf %39, %141 : vector<8x128xf32>
    %143 = arith.mulf %142, %60 : vector<8x128xf32>
    %144 = math.tanh %143 : vector<8x128xf32>
    %145 = arith.mulf %144, %63 : vector<8x128xf32>
    %146 = arith.addf %145, %66 : vector<8x128xf32>
    %147 = vector.extract_strided_slice %146 {offsets = [0, 0], sizes = [8, 32], strides = [1, 1]} : vector<8x128xf32> to vector<8x32xf32>
    %148 = vector.extract_strided_slice %146 {offsets = [0, 32], sizes = [8, 32], strides = [1, 1]} : vector<8x128xf32> to vector<8x32xf32>
    %149 = vector.extract_strided_slice %146 {offsets = [0, 64], sizes = [8, 32], strides = [1, 1]} : vector<8x128xf32> to vector<8x32xf32>
    %150 = vector.extract_strided_slice %146 {offsets = [0, 96], sizes = [8, 32], strides = [1, 1]} : vector<8x128xf32> to vector<8x32xf32>
    %151 = arith.mulf %148, %138 : vector<8x32xf32>
    %152 = arith.mulf %147, %149 : vector<8x32xf32>
    %153 = arith.addf %151, %152 : vector<8x32xf32>
    %154 = math.tanh %153 : vector<8x32xf32>
    %155 = arith.mulf %150, %154 : vector<8x32xf32>
    %cst_18 = arith.constant dense<0.000000e+00> : vector<8x128xf32>
    %156 = tpu.matmul %155, %2, %cst_18 {dimension_numbers = #tpu.dot_dimension_numbers<[1], [0], [0], [1], [0, 0, 1, 1], [], []>} : vector<8x32xf32>, vector<32x128xf32>, vector<8x128xf32> -> vector<8x128xf32>
    %157 = arith.addf %45, %156 : vector<8x128xf32>
    %158 = arith.mulf %157, %60 : vector<8x128xf32>
    %159 = math.tanh %158 : vector<8x128xf32>
    %160 = arith.mulf %159, %63 : vector<8x128xf32>
    %161 = arith.addf %160, %66 : vector<8x128xf32>
    %162 = vector.extract_strided_slice %161 {offsets = [0, 0], sizes = [8, 32], strides = [1, 1]} : vector<8x128xf32> to vector<8x32xf32>
    %163 = vector.extract_strided_slice %161 {offsets = [0, 32], sizes = [8, 32], strides = [1, 1]} : vector<8x128xf32> to vector<8x32xf32>
    %164 = vector.extract_strided_slice %161 {offsets = [0, 64], sizes = [8, 32], strides = [1, 1]} : vector<8x128xf32> to vector<8x32xf32>
    %165 = vector.extract_strided_slice %161 {offsets = [0, 96], sizes = [8, 32], strides = [1, 1]} : vector<8x128xf32> to vector<8x32xf32>
    %166 = arith.mulf %163, %153 : vector<8x32xf32>
    %167 = arith.mulf %162, %164 : vector<8x32xf32>
    %168 = arith.addf %166, %167 : vector<8x32xf32>
    %169 = math.tanh %168 : vector<8x32xf32>
    %170 = arith.mulf %165, %169 : vector<8x32xf32>
    %cst_19 = arith.constant dense<0.000000e+00> : vector<8x128xf32>
    %171 = tpu.matmul %170, %2, %cst_19 {dimension_numbers = #tpu.dot_dimension_numbers<[1], [0], [0], [1], [0, 0, 1, 1], [], []>} : vector<8x32xf32>, vector<32x128xf32>, vector<8x128xf32> -> vector<8x128xf32>
    %172 = arith.addf %51, %171 : vector<8x128xf32>
    %173 = arith.mulf %172, %60 : vector<8x128xf32>
    %174 = math.tanh %173 : vector<8x128xf32>
    %175 = arith.mulf %174, %63 : vector<8x128xf32>
    %176 = arith.addf %175, %66 : vector<8x128xf32>
    %177 = vector.extract_strided_slice %176 {offsets = [0, 0], sizes = [8, 32], strides = [1, 1]} : vector<8x128xf32> to vector<8x32xf32>
    %178 = vector.extract_strided_slice %176 {offsets = [0, 32], sizes = [8, 32], strides = [1, 1]} : vector<8x128xf32> to vector<8x32xf32>
    %179 = vector.extract_strided_slice %176 {offsets = [0, 64], sizes = [8, 32], strides = [1, 1]} : vector<8x128xf32> to vector<8x32xf32>
    %180 = vector.extract_strided_slice %176 {offsets = [0, 96], sizes = [8, 32], strides = [1, 1]} : vector<8x128xf32> to vector<8x32xf32>
    %181 = arith.mulf %178, %168 : vector<8x32xf32>
    %182 = arith.mulf %177, %179 : vector<8x32xf32>
    %183 = arith.addf %181, %182 : vector<8x32xf32>
    %184 = math.tanh %183 : vector<8x32xf32>
    %185 = arith.mulf %180, %184 : vector<8x32xf32>
    %c0_20 = arith.constant 0 : index
    %c0_21 = arith.constant 0 : index
    %186 = vector.load %arg4[%c0_20, %c0_21] : memref<32x128xf32, #tpu.memory_space<vmem>>, vector<32x128xf32>
    %cst_22 = arith.constant dense<0.000000e+00> : vector<8x128xf32>
    %187 = tpu.matmul %185, %186, %cst_22 {dimension_numbers = #tpu.dot_dimension_numbers<[1], [0], [0], [1], [0, 0, 1, 1], [], []>} : vector<8x32xf32>, vector<32x128xf32>, vector<8x128xf32> -> vector<8x128xf32>
    %c0_23 = arith.constant 0 : index
    %c0_24 = arith.constant 0 : index
    %188 = vector.load %arg5[%c0_23, %c0_24] : memref<1x128xf32, #tpu.memory_space<vmem>>, vector<1x128xf32>
    %189 = vector.broadcast %188 : vector<1x128xf32> to vector<8x128xf32>
    %190 = arith.addf %187, %189 : vector<8x128xf32>
    %c0_25 = arith.constant 0 : index
    %c0_26 = arith.constant 0 : index
    %191 = vector.load %arg6[%c0_25, %c0_26] : memref<8x128xf32, #tpu.memory_space<vmem>>, vector<8x128xf32>
    tpu.vector_store %arg6[%c0_25, %c0_26], %190 {strides = array<i32>} : memref<8x128xf32, #tpu.memory_space<vmem>>, vector<8x128xf32>,
    return
  }
}

</mosaic_0001>

<bundles_post_ra>
// kernel: forward.1
= control target key start
LH: loop header
LB: loop body
LE: loop exit
PB: predicated region body
PF: predicated region fallthrough
CT: control target
= control target key end

     0   :  { %11 = vsyncpa [#allocation3], 0  ;;  %s802_s0 = inlined_call_operand.vmem [shape: f32[8,8], index: 0, kind: input, shape index: {}]   ;;  %s803_s1 = inlined_call_operand.vmem [shape: f32[1,128], index: 1, kind: input, shape index: {}]   ;;  %s804_s2 = inlined_call_operand.hbm [shape: f32[32,128], index: 2, kind: input, shape index: {}]   ;;  %s805_s3 = inlined_call_operand.vmem [shape: f32[1,128], index: 3, kind: input, shape index: {}]   ;;  %s806_s4 = inlined_call_operand.hbm [shape: f32[32,128], index: 4, kind: input, shape index: {}]   ;;  %s807_s5 = inlined_call_operand.vmem [shape: f32[1,128], index: 5, kind: input, shape index: {}]   ;;  %s808_s6 = inlined_call_operand.vmem [shape: f32[8,128], index: 6, kind: output, shape index: {}]  }
   0x1   :  { %s21_s23 = sshll.u32 %s804_s2, 4  ;;  %s22_s23 = int_to_ptr.hbm [resolvable:$true] %s21_s23 }
   0x2   :  { %12 = vsyncpa [#allocation5], 0  ;;  %s633_s24 = smov [#allocation2]   ;;  %s36_s28 = sshll.u32 %s806_s4, 4  ;;  %s37_s28 = int_to_ptr.hbm [resolvable:$true] %s36_s28 }
   0x3   :  { %s23_s25 = sshll.u32 %s633_s24, 4  ;;  %s634_s29 = smov 128   ;;  %s24_s25 = int_to_ptr.vmem [resolvable:$true] %s23_s25 }
   0x4   :  { %s635_s30 = smov 8   ;;  %s636_s7 = smov [#allocation4]  }
   0x5   :  { %29 = dma.hbm_to_vmem [thread:$0]  %s22_s23, 512, %s24_s25, [#allocation3], %s634_s29, %s634_s29, %s635_s30  }
   0x6   :  { %s38_s8 = sshll.u32 %s636_s7, 4  ;;  %s39_s8 = int_to_ptr.vmem [resolvable:$true] %s38_s8 }
   0x7   :  { %44 = dma.hbm_to_vmem [thread:$0]  %s37_s28, 512, %s39_s8, [#allocation5], %s634_s29, %s634_s29, %s635_s30  }
   0x8   :  { %629 = dma.done.wait [#allocation3], 512  }
   0x9   :  { %630 = vsyncadd [#allocation3], 4294966784 }
   0xa   :  { %631 = dma.done.wait [#allocation5], 512  }
   0xb   :  { %632 = vsyncadd [#allocation5], 4294966784  ;;  %v637_v0 = vmov 0   ;;  %v692_v1 = vld [vmem:[%s802_s0] sm:$0xff]  ;;  %v117_v2 = vlaneseq  ;;  %v638_v8 = vmov 0.5   ;;  %s639_s0 = smov 64  }
   0xc   :  { %538 = vset.pattern.permute.xlu0 %v637_v0  ;;  %v698_v4 = vld [vmem:[%s803_s1] ss:$0 sm:$0xff]  ;;  %s640_s1 = smov 32   ;;  %v60_v22 = vld [vmem:[#allocation2 + $0x18] sm:$0xff]  ;;  %v59_v23 = vld [vmem:[#allocation2 + $0x10] sm:$0xff]  ;;  %v641_v28 = vmov 1  }
   0xd   :  { %64 = vperm.xlu0 %538, %v692_v1   ;;  %v118_v3 = vand.u32 127, %v117_v2  ;;  %v703_v5 = vld [vmem:[%s805_s3] ss:$0 sm:$0xff]  ;;  %163 = vmatpush.msra.mxu0 %v60_v22  ;;  %v58_v24 = vld [vmem:[#allocation2 + $0x8] sm:$0xff]  ;;  %vm148_vm3 = vcmask 261120   ;;  %v642_v47 = vmov 2  }
   0xe   :  { %210 = vmatpush.msra.mxu1 %v60_v22  ;;  %257 = vmatpush.msra.mxu2 %v60_v22  ;;  %v57_v25 = vld [vmem:[#allocation2] sm:$0xff] }
   0xf   :  { %vm119_vm0 = vcmp.ge.s32.totalorder %v118_v3, 64  ;;  %vm120_vm1 = vcmp.lt.s32.totalorder %v118_v3, 96  ;;  %304 = vmatpush.msra.mxu3 %v60_v22  ;;  %164 = vmatpush.msra.mxu0 %v59_v23  ;;  %v643_v3 = vmov 3  }
  0x10   :  { %vm121_vm2 = vmand %vm119_vm0, %vm120_vm1  ;;  %211 = vmatpush.msra.mxu1 %v59_v23  ;;  %258 = vmatpush.msra.mxu2 %v59_v23 }
  0x11   :  { %v706_v9 = vsel %vm121_vm2, 1.0, %v638_v8  ;;  %v710_v13 = vsel %vm121_vm2, 0.0, %v638_v8  ;;  %305 = vmatpush.msra.mxu3 %v59_v23  ;;  %165 = vmatpush.msra.mxu0 %v58_v24 }
  0x12   :  { %212 = vmatpush.msra.mxu1 %v58_v24  ;;  %259 = vmatpush.msra.mxu2 %v58_v24 }
  0x13   :  { %306 = vmatpush.msra.mxu3 %v58_v24  ;;  %166 = vmatpush.msra.mxu0 %v57_v25 }
  0x14   :  { %213 = vmatpush.msra.mxu1 %v57_v25  ;;  %260 = vmatpush.msra.mxu2 %v57_v25 }
  0x15   :  { %307 = vmatpush.msra.mxu3 %v57_v25  ;;  %351 = vmatpush.msrb.mxu0 %v60_v22 }
  0x16   :  { %398 = vmatpush.msrb.mxu1 %v60_v22  ;;  %445 = vmatpush.msrb.mxu2 %v60_v22 }
  0x17   :  { %352 = vmatpush.msrb.mxu0 %v59_v23  ;;  %539 = vset.pattern.permute.xlu2 %v641_v28 }
  0x18   :  { %399 = vmatpush.msrb.mxu1 %v59_v23  ;;  %446 = vmatpush.msrb.mxu2 %v59_v23 }
  0x19   :  { %353 = vmatpush.msrb.mxu0 %v58_v24  ;;  %540 = vset.pattern.permute.xlu1 %v642_v47 }
  0x1a   :  { %400 = vmatpush.msrb.mxu1 %v58_v24  ;;  %447 = vmatpush.msrb.mxu2 %v58_v24 }
  0x1b   :  { %354 = vmatpush.msrb.mxu0 %v57_v25  ;;  %541 = vset.pattern.permute.xlu0 %v643_v3 }
  0x1c   :  { %401 = vmatpush.msrb.mxu1 %v57_v25  ;;  %448 = vmatpush.msrb.mxu2 %v57_v25 }
  0x7f   :  { %v65_v6 = vpop.permute.xlu0 %64 }
  0x80   :  { %v70_v7 = vmul.f32 %v698_v4, %v65_v6 }
  0x82   :  { %v74_v10 = vadd.f32 %v703_v5, %v70_v7 }
  0x84   :  { %v124_v11 = vmul.f32 %v706_v9, %v74_v10 }
  0x86   :  { %549 = vtanh.f32 %v124_v11 }
  0x8c   :  { %v550_v12 = vpop.eup %549 }
  0x8d   :  { %v126_v14 = vmul.f32 %v550_v12, %v706_v9 }
  0x8f   :  { %v127_v15 = vadd.f32 %v126_v14, %v710_v13 }
  0x91   :  { %130 = vrot.lane.b32.xlu0 %v127_v15, %s639_s0  ;;  %v128_v18 = vmul.f32 0.0, %v127_v15 }
 0x103   :  { %v131_v16 = vpop.permute.xlu0 %130 }
 0x104   :  { %v133_v17 = vmul.f32 %v131_v16, %v127_v15 }
 0x106   :  { %135 = vrot.lane.b32.xlu1 %v133_v17, %s640_s1 }
 0x178   :  { %v136_v19 = vpop.permute.xlu1 %135 }
 0x179   :  { %v138_v20 = vadd.f32 %v136_v19, %v128_v18 }
 0x17b   :  { %551 = vtanh.f32 %v138_v20 }
 0x181   :  { %v552_v21 = vpop.eup %551 }
 0x182   :  { %141 = vrot.lane.b32.xlu1 %v552_v21, %s639_s0 }
 0x1f4   :  { %v142_v26 = vpop.permute.xlu1 %141 }
 0x1f5   :  { %v144_v27 = vmul.f32 %v142_v26, %v127_v15  ;;  %v644_v26 = vmov 4  }
 0x1f7   :  { %146 = vrot.lane.b32.xlu2 %v144_v27, %s640_s1 }
 0x1ff   :  { %76 = vperm.xlu2 %539, %v692_v1  }
 0x251   :  { %v147_v29 = vpop.permute.xlu2 %146 }
 0x252   :  { %515 = vmatmul.msk.f32.vlgmr.msra.gmra.mxu0 %vm148_vm3, %v147_v29 }
 0x259   :  { %v77_v30 = vpop.permute.xlu2 %76 }
 0x25a   :  { %v79_v31 = vmul.f32 %v698_v4, %v77_v30 }
 0x25c   :  { %v80_v32 = vadd.f32 %v703_v5, %v79_v31 }
 0x2cf   :  { %v168_v33 = vpop.f32.mrf.mxu0 }
 0x2d0   :  { %v171_v34 = vadd.f32 %v168_v33, %v80_v32 }
 0x2d2   :  { %v172_v35 = vmul.f32 %v171_v34, %v706_v9 }
 0x2d4   :  { %553 = vtanh.f32 %v172_v35 }
 0x2da   :  { %v554_v36 = vpop.eup %553 }
 0x2db   :  { %v174_v37 = vmul.f32 %v554_v36, %v706_v9 }
 0x2dd   :  { %v175_v38 = vadd.f32 %v174_v37, %v710_v13 }
 0x2df   :  { %178 = vrot.lane.b32.xlu0 %v175_v38, %s639_s0  ;;  %v176_v41 = vmul.f32 %v175_v38, %v138_v20 }
 0x351   :  { %v179_v39 = vpop.permute.xlu0 %178 }
 0x352   :  { %v181_v40 = vmul.f32 %v179_v39, %v175_v38 }
 0x354   :  { %183 = vrot.lane.b32.xlu1 %v181_v40, %s640_s1 }
 0x35c   :  { %82 = vperm.xlu1 %540, %v692_v1  }
 0x3c6   :  { %v184_v42 = vpop.permute.xlu1 %183 }
 0x3c7   :  { %v186_v43 = vadd.f32 %v184_v42, %v176_v41 }
 0x3c9   :  { %555 = vtanh.f32 %v186_v43 }
 0x3ce   :  { %v83_v49 = vpop.permute.xlu1 %82 }
 0x3cf   :  { %v556_v44 = vpop.eup %555  ;;  %v85_v50 = vmul.f32 %v698_v4, %v83_v49 }
 0x3d0   :  { %189 = vrot.lane.b32.xlu2 %v556_v44, %s639_s0 }
 0x3d1   :  { %v86_v51 = vadd.f32 %v703_v5, %v85_v50 }
 0x42a   :  { %v190_v45 = vpop.permute.xlu2 %189 }
 0x42b   :  { %v192_v46 = vmul.f32 %v190_v45, %v175_v38  ;;  %v645_v45 = vmov 5  }
 0x42d   :  { %194 = vrot.lane.b32.xlu0 %v192_v46, %s640_s1 }
 0x49f   :  { %v195_v48 = vpop.permute.xlu0 %194 }
 0x4a0   :  { %516 = vmatmul.msk.f32.vlgmr.msra.gmra.mxu1 %vm148_vm3, %v195_v48 }
 0x51d   :  { %v215_v52 = vpop.f32.mrf.mxu1 }
 0x51e   :  { %v218_v53 = vadd.f32 %v215_v52, %v86_v51 }
 0x520   :  { %v219_v54 = vmul.f32 %v218_v53, %v706_v9 }
 0x522   :  { %557 = vtanh.f32 %v219_v54 }
 0x528   :  { %v558_v55 = vpop.eup %557 }
 0x529   :  { %v221_v56 = vmul.f32 %v558_v55, %v706_v9 }
 0x52b   :  { %v222_v57 = vadd.f32 %v221_v56, %v710_v13 }
 0x52d   :  { %225 = vrot.lane.b32.xlu2 %v222_v57, %s639_s0  ;;  %v223_v60 = vmul.f32 %v222_v57, %v186_v43 }
 0x587   :  { %v226_v58 = vpop.permute.xlu2 %225 }
 0x588   :  { %v228_v59 = vmul.f32 %v226_v58, %v222_v57 }
 0x58a   :  { %230 = vrot.lane.b32.xlu0 %v228_v59, %s640_s1 }
 0x592   :  { %88 = vperm.xlu0 %541, %v692_v1  }
 0x59a   :  { %542 = vset.pattern.permute.xlu0 %v644_v26 }
 0x59b   :  { %94 = vperm.xlu0 %542, %v692_v1  }
 0x5a3   :  { %543 = vset.pattern.permute.xlu0 %v645_v45 }
 0x5a4   :  { %100 = vperm.xlu0 %543, %v692_v1  }
 0x5fc   :  { %v231_v61 = vpop.permute.xlu0 %230 }
 0x5fd   :  { %v233_v62 = vadd.f32 %v231_v61, %v223_v60 }
 0x5ff   :  { %559 = vtanh.f32 %v233_v62 }
 0x604   :  { %v89_v7 = vpop.permute.xlu0 %88 }
 0x605   :  { %v560_v63 = vpop.eup %559  ;;  %v91_v8 = vmul.f32 %v698_v4, %v89_v7 }
 0x606   :  { %236 = vrot.lane.b32.xlu1 %v560_v63, %s639_s0 }
 0x607   :  { %v92_v10 = vadd.f32 %v703_v5, %v91_v8 }
 0x60d   :  { %v95_v28 = vpop.permute.xlu0 %94 }
 0x60e   :  { %v97_v29 = vmul.f32 %v698_v4, %v95_v28 }
 0x610   :  { %v98_v30 = vadd.f32 %v703_v5, %v97_v29 }
 0x616   :  { %v101_v47 = vpop.permute.xlu0 %100 }
 0x617   :  { %v103_v48 = vmul.f32 %v698_v4, %v101_v47 }
 0x619   :  { %v104_v49 = vadd.f32 %v703_v5, %v103_v48 }
 0x678   :  { %v237_v0 = vpop.permute.xlu1 %236 }
 0x679   :  { %v239_v2 = vmul.f32 %v237_v0, %v222_v57  ;;  %v646_v0 = vmov 6  }
 0x67a   :  { %544 = vset.pattern.permute.xlu0 %v646_v0 }
 0x67b   :  { %241 = vrot.lane.b32.xlu2 %v239_v2, %s640_s1  ;;  %106 = vperm.xlu0 %544, %v692_v1  }
 0x6d5   :  { %v242_v6 = vpop.permute.xlu2 %241 }
 0x6d6   :  { %517 = vmatmul.msk.f32.vlgmr.msra.gmra.mxu2 %vm148_vm3, %v242_v6 }
 0x6ed   :  { %v107_v3 = vpop.permute.xlu0 %106 }
 0x6ee   :  { %v109_v6 = vmul.f32 %v698_v4, %v107_v3 }
 0x6f0   :  { %v110_v7 = vadd.f32 %v703_v5, %v109_v6 }
 0x759   :  { %v262_v11 = vpop.f32.mrf.mxu2 }
 0x75a   :  { %v265_v12 = vadd.f32 %v262_v11, %v92_v10 }
 0x75c   :  { %v266_v14 = vmul.f32 %v265_v12, %v706_v9 }
 0x75e   :  { %561 = vtanh.f32 %v266_v14 }
 0x764   :  { %v562_v15 = vpop.eup %561 }
 0x765   :  { %v268_v16 = vmul.f32 %v562_v15, %v706_v9 }
 0x767   :  { %v269_v17 = vadd.f32 %v268_v16, %v710_v13 }
 0x769   :  { %272 = vrot.lane.b32.xlu1 %v269_v17, %s639_s0  ;;  %v270_v20 = vmul.f32 %v269_v17, %v233_v62 }
 0x7db   :  { %v273_v18 = vpop.permute.xlu1 %272 }
 0x7dc   :  { %v275_v19 = vmul.f32 %v273_v18, %v269_v17 }
 0x7de   :  { %277 = vrot.lane.b32.xlu2 %v275_v19, %s640_s1 }
 0x838   :  { %v278_v21 = vpop.permute.xlu2 %277 }
 0x839   :  { %v280_v22 = vadd.f32 %v278_v21, %v270_v20 }
 0x83b   :  { %563 = vtanh.f32 %v280_v22 }
 0x841   :  { %v564_v23 = vpop.eup %563 }
 0x842   :  { %283 = vrot.lane.b32.xlu1 %v564_v23, %s639_s0 }
 0x8b4   :  { %v284_v24 = vpop.permute.xlu1 %283 }
 0x8b5   :  { %v286_v25 = vmul.f32 %v284_v24, %v269_v17  ;;  %v647_v24 = vmov 7  }
 0x8b6   :  { %545 = vset.pattern.permute.xlu0 %v647_v24 }
 0x8b7   :  { %288 = vrot.lane.b32.xlu2 %v286_v25, %s640_s1  ;;  %112 = vperm.xlu0 %545, %v692_v1  }
 0x911   :  { %v289_v27 = vpop.permute.xlu2 %288 }
 0x912   :  { %518 = vmatmul.msk.f32.vlgmr.msra.gmra.mxu3 %vm148_vm3, %v289_v27 }
 0x929   :  { %v113_v26 = vpop.permute.xlu0 %112 }
 0x92a   :  { %v115_v27 = vmul.f32 %v698_v4, %v113_v26 }
 0x92c   :  { %v116_v28 = vadd.f32 %v703_v5, %v115_v27 }
 0x995   :  { %v309_v31 = vpop.f32.mrf.mxu3 }
 0x996   :  { %v312_v32 = vadd.f32 %v309_v31, %v98_v30 }
 0x998   :  { %v313_v33 = vmul.f32 %v312_v32, %v706_v9 }
 0x99a   :  { %565 = vtanh.f32 %v313_v33 }
 0x9a0   :  { %v566_v34 = vpop.eup %565 }
 0x9a1   :  { %v315_v35 = vmul.f32 %v566_v34, %v706_v9 }
 0x9a3   :  { %v316_v36 = vadd.f32 %v315_v35, %v710_v13 }
 0x9a5   :  { %319 = vrot.lane.b32.xlu1 %v316_v36, %s639_s0  ;;  %v317_v39 = vmul.f32 %v316_v36, %v280_v22 }
 0xa17   :  { %v320_v37 = vpop.permute.xlu1 %319 }
 0xa18   :  { %v322_v38 = vmul.f32 %v320_v37, %v316_v36 }
 0xa1a   :  { %324 = vrot.lane.b32.xlu2 %v322_v38, %s640_s1  ;;  %v478_v38 = vld [vmem:[#allocation4 + $0x18] sm:$0xff] }
 0xa1b   :  { %500 = vmatpush.msrb.mxu3 %v478_v38 }
 0xa74   :  { %v325_v40 = vpop.permute.xlu2 %324 }
 0xa75   :  { %v327_v41 = vadd.f32 %v325_v40, %v317_v39  ;;  %v477_v39 = vld [vmem:[#allocation4 + $0x10] sm:$0xff]  ;;  %v476_v40 = vld [vmem:[#allocation4 + $0x8] sm:$0xff] }
 0xa76   :  { %501 = vmatpush.msrb.mxu3 %v477_v39 }
 0xa77   :  { %567 = vtanh.f32 %v327_v41 }
 0xa78   :  { %502 = vmatpush.msrb.mxu3 %v476_v40 }
 0xa7d   :  { %v568_v42 = vpop.eup %567 }
 0xa7e   :  { %330 = vrot.lane.b32.xlu1 %v568_v42, %s639_s0 }
 0xaf0   :  { %v331_v43 = vpop.permute.xlu1 %330 }
 0xaf1   :  { %v333_v44 = vmul.f32 %v331_v43, %v316_v36  ;;  %v548_v43 = vld [vmem:[%s807_s5] ss:$0 sm:$0xff] }
 0xaf3   :  { %335 = vrot.lane.b32.xlu2 %v333_v44, %s640_s1 }
 0xb4d   :  { %v336_v46 = vpop.permute.xlu2 %335 }
 0xb4e   :  { %519 = vmatmul.msk.f32.vlgmr.msrb.gmra.mxu0 %vm148_vm3, %v336_v46 }
 0xbcb   :  { %v356_v50 = vpop.f32.mrf.mxu0 }
 0xbcc   :  { %v359_v51 = vadd.f32 %v356_v50, %v104_v49 }
 0xbce   :  { %v360_v52 = vmul.f32 %v359_v51, %v706_v9 }
 0xbd0   :  { %569 = vtanh.f32 %v360_v52 }
 0xbd6   :  { %v570_v53 = vpop.eup %569 }
 0xbd7   :  { %v362_v54 = vmul.f32 %v570_v53, %v706_v9 }
 0xbd9   :  { %v363_v55 = vadd.f32 %v362_v54, %v710_v13 }
 0xbdb   :  { %366 = vrot.lane.b32.xlu1 %v363_v55, %s639_s0  ;;  %v364_v58 = vmul.f32 %v363_v55, %v327_v41 }
 0xc4d   :  { %v367_v56 = vpop.permute.xlu1 %366 }
 0xc4e   :  { %v369_v57 = vmul.f32 %v367_v56, %v363_v55 }
 0xc50   :  { %371 = vrot.lane.b32.xlu2 %v369_v57, %s640_s1 }
 0xcaa   :  { %v372_v59 = vpop.permute.xlu2 %371 }
 0xcab   :  { %v374_v60 = vadd.f32 %v372_v59, %v364_v58 }
 0xcad   :  { %571 = vtanh.f32 %v374_v60 }
 0xcb3   :  { %v572_v61 = vpop.eup %571 }
 0xcb4   :  { %377 = vrot.lane.b32.xlu1 %v572_v61, %s639_s0 }
 0xd26   :  { %v378_v62 = vpop.permute.xlu1 %377 }
 0xd27   :  { %v380_v63 = vmul.f32 %v378_v62, %v363_v55 }
 0xd29   :  { %382 = vrot.lane.b32.xlu2 %v380_v63, %s640_s1 }
 0xd83   :  { %v383_v2 = vpop.permute.xlu2 %382 }
 0xd84   :  { %520 = vmatmul.msk.f32.vlgmr.msrb.gmra.mxu1 %vm148_vm3, %v383_v2 }
 0xe01   :  { %v403_v8 = vpop.f32.mrf.mxu1 }
 0xe02   :  { %v406_v10 = vadd.f32 %v403_v8, %v110_v7 }
 0xe04   :  { %v407_v11 = vmul.f32 %v406_v10, %v706_v9 }
 0xe06   :  { %573 = vtanh.f32 %v407_v11 }
 0xe0c   :  { %v574_v12 = vpop.eup %573 }
 0xe0d   :  { %v409_v14 = vmul.f32 %v574_v12, %v706_v9 }
 0xe0f   :  { %v410_v15 = vadd.f32 %v409_v14, %v710_v13 }
 0xe11   :  { %413 = vrot.lane.b32.xlu1 %v410_v15, %s639_s0  ;;  %v411_v18 = vmul.f32 %v410_v15, %v374_v60 }
 0xe83   :  { %v414_v16 = vpop.permute.xlu1 %413 }
 0xe84   :  { %v416_v17 = vmul.f32 %v414_v16, %v410_v15 }
 0xe86   :  { %418 = vrot.lane.b32.xlu2 %v416_v17, %s640_s1 }
 0xee0   :  { %v419_v19 = vpop.permute.xlu2 %418 }
 0xee1   :  { %v421_v20 = vadd.f32 %v419_v19, %v411_v18 }
 0xee3   :  { %575 = vtanh.f32 %v421_v20 }
 0xee9   :  { %v576_v21 = vpop.eup %575 }
 0xeea   :  { %424 = vrot.lane.b32.xlu1 %v576_v21, %s639_s0 }
 0xf5c   :  { %v425_v22 = vpop.permute.xlu1 %424 }
 0xf5d   :  { %v427_v23 = vmul.f32 %v425_v22, %v410_v15 }
 0xf5f   :  { %429 = vrot.lane.b32.xlu2 %v427_v23, %s640_s1 }
 0xfb9   :  { %v430_v25 = vpop.permute.xlu2 %429 }
 0xfba   :  { %521 = vmatmul.msk.f32.vlgmr.msrb.gmra.mxu2 %vm148_vm3, %v430_v25 }
0x103d   :  { %v450_v29 = vpop.f32.mrf.mxu2 }
0x103e   :  { %v453_v30 = vadd.f32 %v450_v29, %v116_v28 }
0x1040   :  { %v454_v31 = vmul.f32 %v453_v30, %v706_v9 }
0x1042   :  { %577 = vtanh.f32 %v454_v31 }
0x1048   :  { %v578_v32 = vpop.eup %577 }
0x1049   :  { %v456_v33 = vmul.f32 %v578_v32, %v706_v9  ;;  %v475_v9 = vld [vmem:[#allocation4] sm:$0xff] }
0x104a   :  { %503 = vmatpush.msrb.mxu3 %v475_v9 }
0x104b   :  { %v457_v34 = vadd.f32 %v456_v33, %v710_v13 }
0x104d   :  { %460 = vrot.lane.b32.xlu1 %v457_v34, %s639_s0  ;;  %v458_v36 = vmul.f32 %v457_v34, %v421_v20 }
0x10bf   :  { %v461_v1 = vpop.permute.xlu1 %460 }
0x10c0   :  { %v463_v35 = vmul.f32 %v461_v1, %v457_v34 }
0x10c2   :  { %465 = vrot.lane.b32.xlu2 %v463_v35, %s640_s1 }
0x111c   :  { %v466_v4 = vpop.permute.xlu2 %465 }
0x111d   :  { %v468_v37 = vadd.f32 %v466_v4, %v458_v36 }
0x111f   :  { %579 = vtanh.f32 %v468_v37 }
0x1125   :  { %v580_v5 = vpop.eup %579 }
0x1126   :  { %471 = vrot.lane.b32.xlu1 %v580_v5, %s639_s0 }
0x1198   :  { %v472_v13 = vpop.permute.xlu1 %471 }
0x1199   :  { %v474_v41 = vmul.f32 %v472_v13, %v457_v34 }
0x119b   :  { %484 = vrot.lane.b32.xlu2 %v474_v41, %s640_s1 }
0x11f5   :  { %v485_v42 = vpop.permute.xlu2 %484 }
0x11f6   :  { %522 = vmatmul.msk.f32.vlgmr.msrb.gmra.mxu3 %vm148_vm3, %v485_v42 }
0x1279   :  { %v505_v44 = vpop.f32.mrf.mxu3 }
0x127a   :  { %v506_v45 = vadd.f32 %v548_v43, %v505_v44 }
0x127c   :  { %508 = vst [vmem:[%s808_s6] sm:$0xff] %v506_v45 }
0x127d   :  { %513 = vsyncpa [#allocation3], 1 }
0x127e   :  { %514 = vsyncpa [#allocation5], 1 }

</bundles_post_ra>
